<compile_context>
chip_gen: v7x
topology: tpu7x:2x2x1
jax: 0.10.0
libtpu: 0.0.40
codegen_flags: <defaults>
</compile_context>

<pallas_src>
import jax
import jax.numpy as jnp
from jax.experimental import pallas as pl
from jax.experimental.pallas import tpu as pltpu


# ---------------------------------------------------------------- kernel ----

def _linear_kernel(x_ref, w_ref, b_ref, o_ref):
    """o = x @ w + b for one row-tile of x; w and b are fully VMEM-resident."""
    o_ref[...] = (
        jnp.dot(
            x_ref[...],
            w_ref[...],
            preferred_element_type=jnp.float32,
            precision=jax.lax.Precision.HIGHEST,
        )
        + b_ref[...]
    )


# --------------------------------------------------------------- wrapper ----

_ROW_TILE_CAP = 4096  # sweepable 2048-8192; amortizes ~0.35 µs per grid step


def _round_up(x, m):
    return ((x + m - 1) // m) * m


def _num_tensorcores_per_chip():
    """2 on v7x (megacore grid sharding), 1 on v5e/v6e. Never raises."""
    try:
        kind = (getattr(jax.devices()[0], "device_kind", "") or "").lower()
        if "v7" in kind:
            return 2
    except Exception:
        pass
    return 1


def _choose_row_tile(n, num_cores):
    """Big row tiles amortize per-step overhead.

    v7x (2 TCs): keep an even, balanced number (>=2) of row tiles so the
    'parallel' grid axis shards across both cores.
    v5e/v6e (1 TC): single big tile; forcing a split is pure per-step cost.
    """
    if n <= 8:
        return n  # full-extent block (valid even when < 8)
    if num_cores > 1:
        steps = max(2, 2 * pl.cdiv(n, 2 * _ROW_TILE_CAP))
        return max(8, _round_up(pl.cdiv(n, steps), 8))
    return min(_ROW_TILE_CAP, _round_up(n, 8))


def pallas_linear(x, w, b2):
    """x: (N, Din) f32, w: (Din, Dout) f32, b2: (1, Dout) f32 -> (N, Dout) f32.

    W and b are whole-array VMEM-resident blocks; only the batch axis is tiled.
    # TODO(synk): if reused with very large Din (>~16K on v5e, >~32K on v7x),
    # add a K-reduction grid axis (pl.when-initialized accumulator) or raise
    # vmem_limit_bytes — the resident (Din, Dout) W block would no longer fit.
    """
    x = x.astype(jnp.float32)  # no-op when already f32
    N, Din = x.shape
    Dout = w.shape[1]

    tm = _choose_row_tile(N, _num_tensorcores_per_chip())
    grid = (pl.cdiv(N, tm),)

    return pl.pallas_call(
        _linear_kernel,
        out_shape=jax.ShapeDtypeStruct((N, Dout), jnp.float32),
        grid_spec=pltpu.PrefetchScalarGridSpec(
            num_scalar_prefetch=0,
            grid=grid,
            in_specs=[
                pl.BlockSpec((tm, Din), lambda i: (i, 0)),    # row tile of X
                pl.BlockSpec((Din, Dout), lambda i: (0, 0)),  # resident W (full array)
                pl.BlockSpec((1, Dout), lambda i: (0, 0)),    # resident b (full array)
            ],
            out_specs=pl.BlockSpec((tm, Dout), lambda i: (i, 0)),  # unpadded Dout
        ),
        compiler_params=pltpu.CompilerParams(
            dimension_semantics=("parallel",),
        ),
    )(x, w, b2)


# ----------------------------------------------------------------- model ----

class LogisticRegressionPallas:
    """Inference-only port of LogisticRegression.forward (one nn.Linear)."""

    def __init__(self, in_dim, out_dim=10, key=None):
        if key is None:
            key = jax.random.PRNGKey(0)
        kw, _ = jax.random.split(key)
        # kaiming_normal_-style init (what .fit() would start from), bias zero.
        # torch weight (out, in) stored pre-transposed as (in, out); bias kept
        # as (1, out). All parameter prep is done once here, not per forward.
        std = (2.0 / in_dim) ** 0.5
        self.W = (jax.random.normal(kw, (in_dim, out_dim), jnp.float32) * std)
        self.b = jnp.zeros((1, out_dim), jnp.float32)
        # TODO(synk): LogisticRegression.fit (LBFGS + cross-entropy + L2 reg) is a
        # training procedure, not part of forward(); not reproduced as a kernel.

    def __call__(self, X):
        return pallas_linear(X, self.W, self.b)

    def reference(self, X):
        """Pure-jnp reference of the same forward pass."""
        return X.astype(jnp.float32) @ self.W + self.b


# ------------------------------------------------------------------ main ----

if __name__ == "__main__":
    key = jax.random.PRNGKey(0)
    k_x1, k_x2, k_p = jax.random.split(key, 3)

    IN_DIM, OUT_DIM = 16, 10
    model = LogisticRegressionPallas(in_dim=IN_DIM, out_dim=OUT_DIM, key=k_p)

    # Small batch (single grid step on all chips).
    X_small = jax.random.normal(k_x1, (32, IN_DIM), jnp.float32)
    logits_small = model(X_small)
    jax.block_until_ready(logits_small)
    assert logits_small.shape == (32, OUT_DIM)
    assert jnp.allclose(logits_small, model.reference(X_small),
                        atol=1e-4, rtol=1e-4), "mismatch vs reference (small)"

    # Larger batch: exercises the cdiv grid and a partial last row-block
    # (260 is not a multiple of the chosen row tile).
    X_big = jax.random.normal(k_x2, (260, IN_DIM), jnp.float32)
    logits_big = model(X_big)
    jax.block_until_ready(logits_big)
    assert logits_big.shape == (260, OUT_DIM)
    assert jnp.allclose(logits_big, model.reference(X_big),
                        atol=1e-4, rtol=1e-4), "mismatch vs reference (big)"

    print("KERNEL_OK")
</pallas_src>

<mosaic_0001>
module attributes {stable_mosaic.version = 11 : i64} {
  func.func @_linear_kernel(%arg0: i32, %arg1: memref<32x16xf32, #tpu.memory_space<vmem>>, %arg2: memref<16x10xf32, #tpu.memory_space<vmem>>, %arg3: memref<1x10xf32, #tpu.memory_space<vmem>>, %arg4: memref<32x10xf32, #tpu.memory_space<vmem>>) attributes {dimension_semantics = [#tpu.dimension_semantics<parallel>], iteration_bounds = array<i64: 1>, scalar_prefetch = 0 : i64, scratch_operands = 0 : i64, tpu.core_type = #tpu.core_type<tc>, window_params = [{transform_indices = @transform_0, window_bounds = array<i64: 32, 16>}, {pipeline_mode = #tpu.pipeline_mode<synchronous>, transform_indices = @transform_1, window_bounds = array<i64: 16, 10>}, {pipeline_mode = #tpu.pipeline_mode<synchronous>, transform_indices = @transform_2, window_bounds = array<i64: 1, 10>}, {transform_indices = @transform_3, window_bounds = array<i64: 32, 10>}]} {
    %c0 = arith.constant 0 : index
    %c0_0 = arith.constant 0 : index
    %0 = vector.load %arg1[%c0, %c0_0] : memref<32x16xf32, #tpu.memory_space<vmem>>, vector<32x16xf32>
    %c0_1 = arith.constant 0 : index
    %c0_2 = arith.constant 0 : index
    %1 = vector.load %arg2[%c0_1, %c0_2] : memref<16x10xf32, #tpu.memory_space<vmem>>, vector<16x10xf32>
    %cst = arith.constant dense<0.000000e+00> : vector<32x10xf32>
    %2 = tpu.matmul %0, %1, %cst {dimension_numbers = #tpu.dot_dimension_numbers<[1], [0], [0], [1], [0, 0, 1, 1], [], []>, precision = #tpu.contract_precision<fp32>} : vector<32x16xf32>, vector<16x10xf32>, vector<32x10xf32> -> vector<32x10xf32>
    %c0_3 = arith.constant 0 : index
    %c0_4 = arith.constant 0 : index
    %3 = vector.load %arg3[%c0_3, %c0_4] : memref<1x10xf32, #tpu.memory_space<vmem>>, vector<1x10xf32>
    %4 = vector.broadcast %3 : vector<1x10xf32> to vector<32x10xf32>
    %5 = arith.addf %2, %4 : vector<32x10xf32>
    %c0_5 = arith.constant 0 : index
    %c0_6 = arith.constant 0 : index
    %6 = vector.load %arg4[%c0_5, %c0_6] : memref<32x10xf32, #tpu.memory_space<vmem>>, vector<32x10xf32>
    tpu.vector_store %arg4[%c0_5, %c0_6], %5 {strides = array<i32>} : memref<32x10xf32, #tpu.memory_space<vmem>>, vector<32x10xf32>,
    return
  }
  func.func @transform_0(%arg0: i32) -> (i32, i32) {
    %c0_i32 = arith.constant 0 : i32
    %c0_i32_0 = arith.constant 0 : i32
    return %arg0, %c0_i32 : i32, i32
  }
  func.func @transform_1(%arg0: i32) -> (i32, i32) {
    %c0_i32 = arith.constant 0 : i32
    %c0_i32_0 = arith.constant 0 : i32
    %c0_i32_1 = arith.constant 0 : i32
    return %c0_i32, %c0_i32_0 : i32, i32
  }
  func.func @transform_2(%arg0: i32) -> (i32, i32) {
    %c0_i32 = arith.constant 0 : i32
    %c0_i32_0 = arith.constant 0 : i32
    %c0_i32_1 = arith.constant 0 : i32
    return %c0_i32, %c0_i32_0 : i32, i32
  }
  func.func @transform_3(%arg0: i32) -> (i32, i32) {
    %c0_i32 = arith.constant 0 : i32
    %c0_i32_0 = arith.constant 0 : i32
    return %arg0, %c0_i32 : i32, i32
  }
}

</mosaic_0001>

<bundles_post_ra>
// kernel: tpu_custom_call.1
= control target key start
LH: loop header
LB: loop body
LE: loop exit
PB: predicated region body
PF: predicated region fallthrough
CT: control target
= control target key end

     0   :  { %vm27_vm0 = vcmask 130048   ;;  %vm628_vm1 = vcmask 80896   ;;  %s835_s1 = inlined_call_operand.vmem [shape: f32[16,10], index: 1, kind: input, shape index: {}]   ;;  %s836_s0 = inlined_call_operand.vmem [shape: f32[32,16], index: 0, kind: input, shape index: {}]   ;;  %s837_s2 = inlined_call_operand.vmem [shape: f32[1,10], index: 2, kind: input, shape index: {}]   ;;  %s838_s3 = inlined_call_operand.vmem [shape: f32[32,10], index: 3, kind: output, shape index: {}]  }
   0x1   :  { %v18_v0 = vld [vmem:[%s835_s1] sm:$0xff]  ;;  %v19_v1 = vld [vmem:[%s835_s1 + $0x8] sm:$0xff]  ;;  %v16_v7 = vld [vmem:[%s836_s0 + $0x10] sm:$0xff] }
   0x2   :  { %v14_v2 = vld [vmem:[%s836_s0] sm:$0xff]  ;;  %v41_v3 = vand.u32 4294901760, %v18_v0  ;;  %v44_v4 = vand.u32 4294901760, %v19_v1  ;;  %v15_v6 = vld [vmem:[%s836_s0 + $0x8] sm:$0xff]  ;;  %v17_v8 = vld [vmem:[%s836_s0 + $0x18] sm:$0xff]  ;;  %v35_v11 = vsel %vm27_vm0, %v16_v7, 0 }
   0x3   :  { %v29_v5 = vsel %vm27_vm0, %v14_v2, 0  ;;  %v32_v10 = vsel %vm27_vm0, %v15_v6, 0  ;;  %v38_v12 = vsel %vm27_vm0, %v17_v8, 0  ;;  %v127_v15 = vand.u32 4294901760, %v35_v11  ;;  %v637_v46 = vld [vmem:[%s837_s2] ss:$0 sm:$0xff] }
   0x4   :  { %v107_v9 = vand.u32 4294901760, %v29_v5  ;;  %v734_v13 = vpack.c.bf16 %v44_v4, %v41_v3  ;;  %v117_v14 = vand.u32 4294901760, %v32_v10  ;;  %v149_v16 = vsub.f32 %v18_v0, %v41_v3 }
   0x5   :  { %v156_v18 = vsub.f32 %v19_v1, %v44_v4  ;;  %v137_v19 = vand.u32 4294901760, %v38_v12  ;;  %v128_v21 = vsub.f32 %v35_v11, %v127_v15 }
   0x6   :  { %v108_v17 = vsub.f32 %v29_v5, %v107_v9  ;;  %747 = vmatprep.subr.bf16.mxu0 %v734_v13  ;;  %735 = vmatprep.subr.bf16.mxu1 %v734_v13  ;;  %v118_v20 = vsub.f32 %v32_v10, %v117_v14  ;;  %v150_v22 = vand.u32 4294901760, %v149_v16 }
   0x7   :  { %749 = vmatpush3.bf16.msra.mxu0 %v734_v13  ;;  %737 = vmatpush3.bf16.msra.mxu1 %v734_v13  ;;  %v157_v24 = vand.u32 4294901760, %v156_v18  ;;  %v138_v25 = vsub.f32 %v38_v12, %v137_v19  ;;  %v129_v27 = vand.u32 4294901760, %v128_v21  ;;  %v742_v42 = vpack.c.bf16 %v156_v18, %v149_v16 }
   0x8   :  { %v109_v23 = vand.u32 4294901760, %v108_v17  ;;  %v119_v26 = vand.u32 4294901760, %v118_v20  ;;  %v151_v28 = vsub.f32 %v149_v16, %v150_v22 }
   0x9   :  { %v158_v30 = vsub.f32 %v156_v18, %v157_v24  ;;  %v139_v31 = vand.u32 4294901760, %v138_v25  ;;  %v750_v32 = vpack.c.bf16 %v157_v24, %v150_v22  ;;  %v130_v35 = vsub.f32 %v128_v21, %v129_v27 }
   0xa   :  { %708 = vmatprep.mubr.f32.mxu0 %v109_v23  ;;  %v110_v29 = vsub.f32 %v108_v17, %v109_v23  ;;  %v120_v33 = vsub.f32 %v118_v20, %v119_v26  ;;  %v152_v34 = vand.u32 4294901760, %v151_v28 }
   0xb   :  { %709 = vmatmul.mubr.f32.vlgmr.msra.gmra.mrb[0].mxu0 %v119_v26  ;;  %v159_v37 = vand.u32 4294901760, %v158_v30  ;;  %751 = vmatprep.subr.bf16.mxu0 %v750_v32  ;;  %v140_v38 = vsub.f32 %v138_v25, %v139_v31  ;;  %v131_v40 = vand.u32 4294901760, %v130_v35 }
   0xc   :  { %v111_v36 = vand.u32 4294901760, %v110_v29  ;;  %711 = vmatprep.mubr.f32.mxu0 %v129_v27  ;;  %v121_v39 = vand.u32 4294901760, %v120_v33  ;;  %753 = vmatpush3.bf16.msra.mxu0 %v750_v32 }
   0xd   :  { %v738_v41 = vpack.c.bf16 %v159_v37, %v152_v34  ;;  %755 = vmatprep.subr.bf16.mxu0 %v734_v13  ;;  %v141_v43 = vand.u32 4294901760, %v140_v38 }
   0xe   :  { %678 = vmatprep.mubr.f32.mxu1 %v111_v36 }
   0xf   :  { %679 = vmatmul.mubr.f32.vlgmr.msra.gmra.mrb[0].mxu1 %v121_v39  ;;  %712 = vmatmul.mubr.f32.gmra.mrb[2].mxu0 %v139_v31 }
  0x10   :  { %739 = vmatprep.subr.bf16.mxu1 %v738_v41  ;;  %681 = vmatprep.mubr.f32.mxu1 %v131_v40 }
  0x11   :  { %741 = vmatpush3.bf16.msra.mxu1 %v738_v41  ;;  %718 = vmatprep.mubr.f32.mxu0 %v107_v9 }
  0x12   :  { %743 = vmatprep.subr.bf16.mxu1 %v742_v42 }
  0x13   :  { %682 = vmatmul.mubr.f32.gmra.mrb[2].mxu1 %v141_v43  ;;  %719 = vmatmul.mubr.f32.vlgmr.msra.gmra.mrb[0].mxu0 %v117_v14 }
  0x14   :  { %688 = vmatprep.mubr.f32.mxu1 %v107_v9  ;;  %721 = vmatprep.mubr.f32.mxu0 %v127_v15 }
  0x15   :  { %757 = vmatpush3.bf16.msra.mxu0 %v734_v13 }
  0x17   :  { %689 = vmatmul.mubr.f32.vlgmr.msra.gmra.mrb[0].mxu1 %v117_v14  ;;  %722 = vmatmul.mubr.f32.gmra.mrb[2].mxu0 %v137_v19 }
  0x18   :  { %745 = vmatpush3.bf16.msra.mxu1 %v742_v42  ;;  %691 = vmatprep.mubr.f32.mxu1 %v127_v15 }
  0x19   :  { %728 = vmatprep.mubr.f32.mxu0 %v107_v9 }
  0x1b   :  { %692 = vmatmul.mubr.f32.gmra.mrb[2].mxu1 %v137_v19  ;;  %729 = vmatmul.mubr.f32.vlgmr.msra.gmra.mrb[0].mxu0 %v117_v14 }
  0x1c   :  { %698 = vmatprep.mubr.f32.mxu1 %v108_v17  ;;  %731 = vmatprep.mubr.f32.mxu0 %v127_v15 }
  0x1f   :  { %699 = vmatmul.mubr.f32.vlgmr.msra.gmra.mrb[0].mxu1 %v118_v20  ;;  %732 = vmatmul.mubr.f32.gmra.mrb[2].mxu0 %v137_v19 }
  0x20   :  { %701 = vmatprep.mubr.f32.mxu1 %v128_v21 }
  0x23   :  { %702 = vmatmul.mubr.f32.gmra.mrb[2].mxu1 %v138_v25 }
  0xee   :  { %v730_v44 = vpop.f32.mrb[0].mxu0 }
  0xef   :  { %v606_v45 = vpop.f32.mrb[1].mxu0 }
  0xf2   :  { %v700_v47 = vpop.f32.mrb[0].mxu1  ;;  %v733_v48 = vpop.f32.mrb[2].mxu0 }
  0xf3   :  { %v758_v49 = vadd.f32 %v700_v47, %v637_v46  ;;  %v318_v50 = vpop.f32.mrb[1].mxu1  ;;  %v618_v51 = vpop.f32.mrb[3].mxu0 }
  0xf4   :  { %v760_v52 = vadd.f32 %v637_v46, %v318_v50 }
  0xf5   :  { %v759_v53 = vadd.f32 %v758_v49, %v730_v44 }
  0xf6   :  { %v761_v54 = vadd.f32 %v760_v52, %v606_v45  ;;  %v703_v55 = vpop.f32.mrb[2].mxu1 }
  0xf7   :  { %630 = vst.msk [vmem:[%s838_s3 + $0x8] sm:$0xff] %vm628_vm1, %v759_v53  ;;  %v762_v56 = vadd.f32 %v703_v55, %v637_v46  ;;  %v332_v57 = vpop.f32.mrb[3].mxu1 }
  0xf8   :  { %629 = vst.msk [vmem:[%s838_s3] sm:$0xff] %vm628_vm1, %v761_v54  ;;  %v764_v58 = vadd.f32 %v637_v46, %v332_v57 }
  0xf9   :  { %v763_v59 = vadd.f32 %v762_v56, %v733_v48 }
  0xfa   :  { %v765_v60 = vadd.f32 %v764_v58, %v618_v51 }
  0xfb   :  { %632 = vst.msk [vmem:[%s838_s3 + $0x18] sm:$0xff] %vm628_vm1, %v763_v59 }
  0xfc   :  { %631 = vst.msk [vmem:[%s838_s3 + $0x10] sm:$0xff] %vm628_vm1, %v765_v60 }

</bundles_post_ra>
